<compile_context>
chip_gen: v5e
topology: v5e:2x2
jax: 0.10.0
libtpu: 0.0.40
codegen_flags: <defaults>
</compile_context>

<pallas_src>
import functools

import jax
import jax.numpy as jnp
from jax.experimental import pallas as pl
from jax.experimental.pallas import tpu as pltpu


def _round_up(x, m):
    return (x + m - 1) // m * m


def _center_loss_kernel(f_ref, l_ref, c_ref, out_ref, *, batch, tile_b):
    # f_ref:   VMEM (TB, Dp)  feature tile for this grid step
    # l_ref:   VMEM (TB, 1)   int32 labels for this tile
    # c_ref:   VMEM (C, Dp)   full centers table (resident, fetched once)
    # out_ref: SMEM (1, 1)    f32 per-tile partial sum
    i = pl.program_id(0)

    feats = f_ref[...].astype(jnp.float32)           # (TB, Dp)
    labels = l_ref[...]                               # (TB, 1) int32
    centers = c_ref[...].astype(jnp.float32)          # (C, Dp)

    num_classes = centers.shape[0]
    class_ids = jax.lax.broadcasted_iota(jnp.int32, (1, num_classes), 1)
    one_hot = (labels == class_ids).astype(jnp.float32)        # (TB, C)
    gathered = jnp.dot(one_hot, centers,
                       preferred_element_type=jnp.float32)     # (TB, Dp) on MXU

    diff = feats - gathered

    # Mask out rows past the real batch size (batch padding).
    row_idx = i * tile_b + jax.lax.broadcasted_iota(jnp.int32, (tile_b, 1), 0)
    diff = jnp.where(row_idx < batch, diff, 0.0)

    out_ref[0, 0] = jnp.sum(diff * diff)


def center_loss(features, labels, centers, lambda_c=0.003):
    """Pallas implementation of CenterLoss.forward.

    features: (B, D) float
    labels:   (B, 1) int (or (B,))
    centers:  (C, D) float  (the nn.Parameter)
    returns:  scalar f32
    """
    B, D = features.shape
    C = centers.shape[0]
    labels_flat = labels.reshape(B, 1).astype(jnp.int32)

    # Lane-dense feature dim: pad D to a multiple of 128 with zeros.
    # (Zero-padded columns contribute 0 to the squared diff.)
    Dp = _round_up(D, 128)
    if Dp != D:
        features = jnp.pad(features, ((0, 0), (0, Dp - D)))
        centers = jnp.pad(centers, ((0, 0), (0, Dp - D)))

    # Batch tiling: up to 256 rows per grid step, multiple of 8 sublanes.
    TB = min(256, _round_up(B, 8))
    Bp = _round_up(B, TB)
    if Bp != B:
        features = jnp.pad(features, ((0, Bp - B), (0, 0)))
        labels_flat = jnp.pad(labels_flat, ((0, Bp - B), (0, 0)))
    num_tiles = Bp // TB

    kernel = functools.partial(_center_loss_kernel, batch=B, tile_b=TB)

    partials = pl.pallas_call(
        kernel,
        out_shape=jax.ShapeDtypeStruct((num_tiles, 1), jnp.float32),
        grid=(num_tiles,),
        in_specs=[
            # streamed feature tiles
            pl.BlockSpec((TB, Dp), lambda i: (i, 0)),
            # labels for this tile
            pl.BlockSpec((TB, 1), lambda i: (i, 0)),
            # resident centers table: constant index -> DMA'd once
            pl.BlockSpec((C, Dp), lambda i: (0, 0)),
        ],
        out_specs=pl.BlockSpec((1, 1), lambda i: (i, 0),
                               memory_space=pltpu.SMEM),
        compiler_params=pltpu.CompilerParams(
            dimension_semantics=("parallel",),  # independent per-tile partials
        ),
    )(features, labels_flat, centers)

    return jnp.sum(partials) * jnp.float32(lambda_c / (2.0 * B))


def init_centers(key, num_classes, feat_dim):
    # xavier_normal_ for a (num_classes, feat_dim) matrix:
    # std = sqrt(2 / (fan_in + fan_out)) = sqrt(2 / (num_classes + feat_dim))
    std = (2.0 / (num_classes + feat_dim)) ** 0.5
    return std * jax.random.normal(key, (num_classes, feat_dim), dtype=jnp.float32)


if __name__ == "__main__":
    num_classes = 8
    feat_dim = 256
    batch = 8
    lambda_c = 0.003

    key = jax.random.PRNGKey(0)
    k_feat, k_centers, k_labels = jax.random.split(key, 3)

    features = jax.random.normal(k_feat, (batch, feat_dim), dtype=jnp.float32)
    labels = jax.random.randint(k_labels, (batch, 1), 0, num_classes, dtype=jnp.int32)
    centers = init_centers(k_centers, num_classes, feat_dim)

    loss = center_loss(features, labels, centers, lambda_c=lambda_c)
    loss = jax.block_until_ready(loss)

    # Pure-JAX reference for sanity checking.
    cb = centers[labels.reshape(-1)]
    ref = lambda_c * jnp.mean(jnp.sum((features - cb) ** 2, axis=1)) / 2.0
    assert jnp.allclose(loss, ref, rtol=1e-5, atol=1e-6), (loss, ref)

    print("KERNEL_OK")
</pallas_src>

<mosaic_0001>
module attributes {stable_mosaic.version = 11 : i64} {
  func.func @_center_loss_kernel(%arg0: i32, %arg1: memref<8x256xf32, #tpu.memory_space<vmem>>, %arg2: memref<8x1xi32, #tpu.memory_space<vmem>>, %arg3: memref<8x256xf32, #tpu.memory_space<vmem>>, %arg4: memref<1x1xf32, #tpu.memory_space<smem>>) attributes {dimension_semantics = [#tpu.dimension_semantics<parallel>], iteration_bounds = array<i64: 1>, scalar_prefetch = 0 : i64, scratch_operands = 0 : i64, tpu.core_type = #tpu.core_type<tc>, window_params = [{transform_indices = @transform_0, window_bounds = array<i64: 8, 256>}, {transform_indices = @transform_1, window_bounds = array<i64: 8, 1>}, {pipeline_mode = #tpu.pipeline_mode<synchronous>, transform_indices = @transform_2, window_bounds = array<i64: 8, 256>}, {transform_indices = @transform_3, window_bounds = array<i64: 1, 1>}]} {
    %c0 = arith.constant 0 : index
    %c0_0 = arith.constant 0 : index
    %0 = vector.load %arg1[%c0, %c0_0] : memref<8x256xf32, #tpu.memory_space<vmem>>, vector<8x256xf32>
    %c0_1 = arith.constant 0 : index
    %c0_2 = arith.constant 0 : index
    %1 = vector.load %arg2[%c0_1, %c0_2] : memref<8x1xi32, #tpu.memory_space<vmem>>, vector<8x1xi32>
    %c0_3 = arith.constant 0 : index
    %c0_4 = arith.constant 0 : index
    %2 = vector.load %arg3[%c0_3, %c0_4] : memref<8x256xf32, #tpu.memory_space<vmem>>, vector<8x256xf32>
    %3 = tpu.iota {dimensions = array<i32: 1>} : vector<1x8xi32>
    %4 = vector.broadcast %1 : vector<8x1xi32> to vector<8x8xi32>
    %5 = vector.broadcast %3 : vector<1x8xi32> to vector<8x8xi32>
    %6 = arith.cmpi eq, %4, %5 : vector<8x8xi32>
    %7 = arith.extui %6 : vector<8x8xi1> to vector<8x8xi32>
    %8 = arith.sitofp %7 : vector<8x8xi32> to vector<8x8xf32>
    %cst = arith.constant dense<0.000000e+00> : vector<8x256xf32>
    %9 = tpu.matmul %8, %2, %cst {dimension_numbers = #tpu.dot_dimension_numbers<[1], [0], [0], [1], [0, 0, 1, 1], [], []>} : vector<8x8xf32>, vector<8x256xf32>, vector<8x256xf32> -> vector<8x256xf32>
    %10 = arith.subf %0, %9 : vector<8x256xf32>
    %c8_i32 = arith.constant 8 : i32
    %11 = arith.muli %arg0, %c8_i32 : i32
    %12 = tpu.iota {dimensions = array<i32: 0>} : vector<8x1xi32>
    %13 = vector.broadcast %11 : i32 to vector<8x1xi32>
    %14 = arith.addi %13, %12 : vector<8x1xi32>
    %c8_i32_5 = arith.constant 8 : i32
    %15 = vector.broadcast %c8_i32_5 : i32 to vector<8x1xi32>
    %16 = arith.cmpi slt, %14, %15 : vector<8x1xi32>
    %cst_6 = arith.constant 0.000000e+00 : f32
    %17 = vector.shape_cast %16 : vector<8x1xi1> to vector<8x1xi1>
    %18 = vector.broadcast %17 : vector<8x1xi1> to vector<8x256xi1>
    %19 = vector.broadcast %cst_6 : f32 to vector<8x256xf32>
    %20 = arith.select %18, %10, %19 : vector<8x256xi1>, vector<8x256xf32>
    %21 = arith.mulf %20, %20 : vector<8x256xf32>
    %22 = vector.shape_cast %21 : vector<8x256xf32> to vector<1x8x256xf32>
    %cst_7 = arith.constant dense<0.000000e+00> : vector<1xf32>
    %23 = vector.multi_reduction <add>, %22, %cst_7 [1, 2] : vector<1x8x256xf32> to vector<1xf32>
    %24 = vector.shape_cast %23 : vector<1xf32> to vector<1x1x1xf32>
    %25 = vector.extract %24[0, 0, 0] : f32 from vector<1x1x1xf32>
    %c0_8 = arith.constant 0 : index
    %c0_9 = arith.constant 0 : index
    %26 = memref.load %arg4[%c0_8, %c0_9] : memref<1x1xf32, #tpu.memory_space<smem>>
    memref.store %25, %arg4[%c0_8, %c0_9] : memref<1x1xf32, #tpu.memory_space<smem>>
    return
  }
  func.func @transform_0(%arg0: i32) -> (i32, i32) {
    %c0_i32 = arith.constant 0 : i32
    %c0_i32_0 = arith.constant 0 : i32
    return %arg0, %c0_i32 : i32, i32
  }
  func.func @transform_1(%arg0: i32) -> (i32, i32) {
    %c0_i32 = arith.constant 0 : i32
    %c0_i32_0 = arith.constant 0 : i32
    return %arg0, %c0_i32 : i32, i32
  }
  func.func @transform_2(%arg0: i32) -> (i32, i32) {
    %c0_i32 = arith.constant 0 : i32
    %c0_i32_0 = arith.constant 0 : i32
    %c0_i32_1 = arith.constant 0 : i32
    return %c0_i32, %c0_i32_0 : i32, i32
  }
  func.func @transform_3(%arg0: i32) -> (i32, i32) {
    %c0_i32 = arith.constant 0 : i32
    %c0_i32_0 = arith.constant 0 : i32
    return %arg0, %c0_i32 : i32, i32
  }
}

</mosaic_0001>

<bundles_post_ra>
// kernel: tpu_custom_call.1
= control target key start
LH: loop header
LB: loop body
LE: loop exit
PB: predicated region body
PF: predicated region fallthrough
CT: control target
= control target key end

     0   :  { %8 = vsyncpa [#allocation3], 0  ;;  %s257_s0 = inlined_call_operand.hbm [shape: f32[8,256], index: 0, kind: input, shape index: {}]   ;;  %s258_s1 = inlined_call_operand.vmem [shape: s32[8,1], index: 1, kind: input, shape index: {}]   ;;  %s259_s2 = inlined_call_operand.hbm [shape: f32[8,256], index: 2, kind: input, shape index: {}]   ;;  %s260_s3 = inlined_call_operand.hbm [shape: f32[1,1], index: 3, kind: output, shape index: {}]  }
   0x1   :  { %9 = vsyncpa [#allocation6], 0 }
   0x2   :  { %10 = vsyncpa [#allocation4], 0  ;;  %s16_s14 = sshll.u32 %s257_s0, 4  ;;  %s220_s15 = smov [#allocation2]   ;;  %s17_s14 = int_to_ptr.hbm [resolvable:$true] %s16_s14 }
   0x3   :  { %s18_s16 = sshll.u32 %s220_s15, 4  ;;  %s29_s19 = sshll.u32 %s259_s2, 4  ;;  %s19_s16 = int_to_ptr.vmem [resolvable:$true] %s18_s16  ;;  %s30_s19 = int_to_ptr.hbm [resolvable:$true] %s29_s19 }
   0x4   :  { %21 = dma.hbm_to_vmem [thread:$0]  %s17_s14, 256, %s19_s16, [#allocation3]  }
   0x5   :  { %s221_s20 = smov [#allocation5]  }
   0x6   :  { %s31_s21 = sshll.u32 %s221_s20, 4  ;;  %s32_s21 = int_to_ptr.vmem [resolvable:$true] %s31_s21 }
   0x7   :  { %34 = dma.hbm_to_vmem [thread:$0]  %s30_s19, 256, %s32_s21, [#allocation6]  }
   0x8   :  { %214 = dma.done.wait [#allocation3], 256  }
   0x9   :  { %215 = vsyncadd [#allocation3], 4294967040 }
   0xa   :  { %216 = dma.done.wait [#allocation6], 256  }
   0xb   :  { %217 = vsyncadd [#allocation6], 4294967040  ;;  %v222_v0 = vmov 0   ;;  %v45_v1 = vld [vmem:[%s258_s1] sm:$0xff]  ;;  %v46_v2 = vld [vmem:[#allocation5] sm:$0xff]  ;;  %v48_v4 = vlaneseq  ;;  %vm56_vm0 = vcmask 64512  }
   0xc   :  { %153 = vset.pattern.permute.xlu0 %v222_v0  ;;  %v47_v3 = vld [vmem:[#allocation5 + $0x8] sm:$0xff]  ;;  %75 = vmatpush.msra.mxu0 %v46_v2  ;;  %v223_v7 = vmov 0.0   ;;  %v43_v9 = vld [vmem:[#allocation2] sm:$0xff]  ;;  %v44_v10 = vld [vmem:[#allocation2 + $0x8] sm:$0xff]  ;;  %s131_s23 = sshll.u32 %s260_s3, 4  ;;  %s224_s25 = smov [#allocation7]   ;;  %s132_s23 = int_to_ptr.hbm [resolvable:$true] %s131_s23 }
   0xd   :  { %51 = vperm.xlu0 %153, %v45_v1   ;;  %95 = vmatpush.msra.mxu1 %v47_v3  ;;  %v49_v5 = vand.u32 127, %v48_v4 }
  0x7f   :  { %v52_v6 = vpop.permute.xlu0 %51 }
  0x80   :  { %vm53_vm1 = vcmp.eq.s32.totalorder %v52_v6, %v49_v5 }
  0x81   :  { %v143_v8 = vsel %vm53_vm1, 1.0, %v223_v7 }
  0x82   :  { %144 = vmatmul.msk.f32.vlgmr.msra.gmra.mxu0 %vm56_vm0, %v143_v8  ;;  %145 = vmatmul.msk.f32.vlgmr.msra.gmra.mxu1 %vm56_vm0, %v143_v8 }
  0xff   :  { %v77_v11 = vpop.f32.mrf.mxu0  ;;  %v97_v12 = vpop.f32.mrf.mxu1 }
 0x100   :  { %v100_v13 = vsub.f32 %v43_v9, %v77_v11  ;;  %v101_v14 = vsub.f32 %v44_v10, %v97_v12 }
 0x102   :  { %v112_v15 = vmul.f32 %v100_v13, %v100_v13  ;;  %v113_v16 = vmul.f32 %v101_v14, %v101_v14 }
 0x104   :  { %v114_v17 = vadd.f32 %v113_v16, %v112_v15 }
 0x106   :  { %115 = vadd.xlane.f32.xlu0 %v114_v17 }
 0x179   :  { %v116_v18 = vpop.xlane.xlu0 %115 }
 0x17a   :  { %v117_v19 = vrot.slane %v116_v18, 4 }
 0x17c   :  { %v118_v20 = vadd.f32 %v117_v19, %v116_v18 }
 0x17e   :  { %v119_v21 = vrot.slane %v118_v20, 2 }
 0x180   :  { %v120_v22 = vadd.f32 %v119_v21, %v118_v20 }
 0x182   :  { %v121_v23 = vrot.slane %v120_v22, 1 }
 0x184   :  { %v122_v24 = vadd.f32 %v121_v23, %v120_v22 }
 0x186   :  { %146 = vpush %v122_v24 }
 0x1b7   :  { %s147_s24 = spop %146 }
 0x1b8   :  { %125 = sst [smem:[#allocation7]] %s147_s24 }
 0x1b9   :  { %134 = dma.smem_to_hbm %s224_s25, 16, %s132_s23, [#allocation4]  }
 0x1ba   :  { %218 = dma.done.wait [#allocation4], 16  }
 0x1bb   :  { %219 = vsyncadd [#allocation4], 4294967280 }
 0x1bc   :  { %139 = sfence }
 0x1bd   :  { %140 = vsyncpa [#allocation3], 1 }
 0x1be   :  { %141 = vsyncpa [#allocation6], 1 }
 0x1bf   :  { %142 = vsyncpa [#allocation4], 1 }

</bundles_post_ra>
